<compile_context>
chip_gen: v6e
topology: v6e:2x2x1
jax: 0.10.0
libtpu: 0.0.40
codegen_flags: <defaults>
</compile_context>

<pallas_src>
import jax
import jax.numpy as jnp
from jax.experimental import pallas as pl
from jax.experimental.pallas import tpu as pltpu

USE_BF16_MXU = True          # bf16 MXU inputs, f32 accumulate + f32 softmax math
_NEG_PAD = -1e30             # bias value for padded vocab columns


# ------------------------------ helpers ------------------------------------ #

def _round_up(x, m):
    return ((x + m - 1) // m) * m


def _vmem_capacity_bytes():
    try:
        return int(pltpu.get_tpu_info().vmem_capacity_bytes)
    except Exception:
        return 64 * 1024 * 1024          # conservative fallback (v7x per-TC)


def _select_tiles(N, D, V, budget_bytes):
    """Pick (tm, tv, nv, Np, Vp) so all buffers fit the VMEM budget."""
    V128 = _round_up(max(V, 1), 128)
    # largest multiple of 128 <= min(2048, V128) that divides V128 (no over-pad)
    tv = 128
    for cand in range(min(2048, V128), 127, -128):
        if V128 % cand == 0:
            tv = cand
            break
    nv = V128 // tv
    w_bytes = 2 if USE_BF16_MXU else 4
    # fixed buffers: double-buffered weight tile + bias tiles + slack
    fixed = 2 * D * tv * w_bytes + 2 * 8 * tv * 4 + (1 << 20)
    # per-row cost: x tile (x2 buffers), out tile (x2 buffers), (m, l) scratch
    per_row = 2 * D * 4 + 2 * tv * 4 + 2 * 128 * 4
    tm_max = max(8, (budget_bytes - fixed) // per_row)
    tm = 8
    for cand in (1024, 512, 256, 128, 64, 32, 16, 8):
        if cand <= tm_max:
            tm = cand
            break
    tm = min(tm, _round_up(N, 8))        # never tile wider than the row count
    Np = _round_up(N, tm)
    return tm, tv, nv, Np, V128


# ----------------------------- Pallas kernel ------------------------------- #

def _generator_kernel(x_ref, w_ref, b_ref, o_ref, m_ref, l_ref):
    # grid = (row_tiles, sweep, vocab_tiles)
    s = pl.program_id(1)
    j = pl.program_id(2)

    @pl.when(jnp.logical_and(s == 0, j == 0))
    def _init():                              # new row tile -> reset accumulators
        m_ref[...] = jnp.full(m_ref.shape, -jnp.inf, m_ref.dtype)
        l_ref[...] = jnp.zeros(l_ref.shape, l_ref.dtype)

    # MXU: (tm, D) @ (D, tv) -> f32 accumulator; bias add in f32.
    x = x_ref[...].astype(w_ref.dtype)
    logits = jnp.dot(x, w_ref[...], preferred_element_type=jnp.float32)
    logits = logits + b_ref[...].astype(jnp.float32)

    @pl.when(s == 0)
    def _accumulate():                        # online logsumexp over vocab tiles
        m_old = m_ref[...]
        m_new = jnp.maximum(m_old, jnp.max(logits, axis=-1, keepdims=True))
        l_ref[...] = (l_ref[...] * jnp.exp(m_old - m_new)
                      + jnp.sum(jnp.exp(logits - m_new), axis=-1, keepdims=True))
        m_ref[...] = m_new

    @pl.when(s == 1)
    def _emit():                              # second sweep: lane-dense output
        lse = m_ref[...] + jnp.log(l_ref[...])
        o_ref[...] = (logits - lse).astype(o_ref.dtype)


# ------------------------------ wrapper ------------------------------------ #

def generator_forward(x, w, b):
    """x: (B, S, D) f32;  w: (D, V) (pre-transposed vs torch nn.Linear);  b: (V,)."""
    B, S, D = x.shape
    V = w.shape[1]
    N = B * S

    capacity = _vmem_capacity_bytes()
    tm, tv, nv, Np, Vp = _select_tiles(N, D, V, int(0.8 * capacity))

    # pad to lane/tile-friendly shapes (sliced off below)
    x2 = x.reshape(N, D)
    if Np != N:
        x2 = jnp.pad(x2, ((0, Np - N), (0, 0)))
    w_in = w.astype(jnp.bfloat16) if USE_BF16_MXU else w
    if Vp != V:
        w_in = jnp.pad(w_in, ((0, 0), (0, Vp - V)))
        b_in = jnp.pad(b, (0, Vp - V), constant_values=_NEG_PAD)
    else:
        b_in = b
    b_in = b_in.reshape(1, Vp).astype(jnp.float32)

    w_bytes = 2 if USE_BF16_MXU else 4
    vmem_needed = (2 * tm * D * 4 + 2 * D * tv * w_bytes + 2 * 8 * tv * 4
                   + 2 * tm * tv * 4 + 2 * tm * 128 * 4)
    vmem_limit = int(min(capacity, max(vmem_needed + (16 << 20), 32 << 20)))

    cost = pl.CostEstimate(
        flops=int(4 * Np * D * Vp),                           # two MXU sweeps
        transcendentals=int(Np * Vp),                         # exp in sweep 0
        bytes_accessed=int(Np * D * 4
                           + 2 * (Np // tm) * D * Vp * w_bytes
                           + Np * Vp * 4),
    )

    out = pl.pallas_call(
        _generator_kernel,
        out_shape=jax.ShapeDtypeStruct((Np, Vp), jnp.float32),
        grid=(Np // tm, 2, nv),
        in_specs=[
            pl.BlockSpec((tm, D), lambda i, s, j: (i, 0)),    # row tile of activations
            pl.BlockSpec((D, tv), lambda i, s, j: (0, j)),    # streamed weight tile
            pl.BlockSpec((1, tv), lambda i, s, j: (0, j)),    # streamed bias tile
        ],
        out_specs=pl.BlockSpec((tm, tv), lambda i, s, j: (i, s * j)),
        scratch_shapes=[pltpu.VMEM((tm, 1), jnp.float32),     # running max  m
                        pltpu.VMEM((tm, 1), jnp.float32)],    # running sum  l
        compiler_params=pltpu.CompilerParams(
            dimension_semantics=("parallel", "arbitrary", "arbitrary"),
            vmem_limit_bytes=vmem_limit),
        cost_estimate=cost,
    )(x2, w_in, b_in)

    return out[:N, :V].reshape(B, S, V)


# ------------------------------ reference ----------------------------------- #

def generator_reference(x, w, b):
    logits = jnp.einsum("bsd,dv->bsv", x, w,
                        precision=jax.lax.Precision.HIGHEST) + b
    return jax.nn.log_softmax(logits, axis=-1)


# ----------------------------------- main ----------------------------------- #

if __name__ == "__main__":
    B, S, D, V = 2, 8, 32, 128   # batch, seq, d_model, vocab

    key = jax.random.PRNGKey(0)
    kx, kw, kb = jax.random.split(key, 3)

    x = jax.random.normal(kx, (B, S, D), jnp.float32)
    # torch nn.Linear stores W as (V, D); we keep it pre-transposed as (D, V).
    w = 0.05 * jax.random.normal(kw, (D, V), jnp.float32)
    b = 0.05 * jax.random.normal(kb, (V,), jnp.float32)

    out = jax.block_until_ready(generator_forward(x, w, b))
    ref = generator_reference(x, w, b)

    assert out.shape == (B, S, V)
    assert bool(jnp.all(jnp.isfinite(out)))
    assert bool(jnp.allclose(out, ref, atol=1e-2, rtol=1e-2))
    # log-softmax rows must sum to 1 in probability space
    assert bool(jnp.allclose(jnp.sum(jnp.exp(out), axis=-1), 1.0, atol=1e-3))
    print("KERNEL_OK")
</pallas_src>

<mosaic_0001>
module attributes {stable_mosaic.version = 11 : i64} {
  func.func @_generator_kernel(%arg0: i32, %arg1: i32, %arg2: i32, %arg3: memref<16x32xf32, #tpu.memory_space<vmem>>, %arg4: memref<32x128xbf16, #tpu.memory_space<vmem>>, %arg5: memref<1x128xf32, #tpu.memory_space<vmem>>, %arg6: memref<16x128xf32, #tpu.memory_space<vmem>>, %arg7: memref<16x1xf32, #tpu.memory_space<vmem>>, %arg8: memref<16x1xf32, #tpu.memory_space<vmem>>) attributes {dimension_semantics = [#tpu.dimension_semantics<parallel>, #tpu.dimension_semantics<arbitrary>, #tpu.dimension_semantics<arbitrary>], iteration_bounds = array<i64: 1, 2, 1>, scalar_prefetch = 0 : i64, scratch_operands = 2 : i64, tpu.core_type = #tpu.core_type<tc>, window_params = [{transform_indices = @transform_0, window_bounds = array<i64: 16, 32>}, {transform_indices = @transform_1, window_bounds = array<i64: 32, 128>}, {transform_indices = @transform_2, window_bounds = array<i64: 1, 128>}, {transform_indices = @transform_3, window_bounds = array<i64: 16, 128>}]} {
    %c0_i32 = arith.constant 0 : i32
    %0 = arith.cmpi eq, %arg1, %c0_i32 : i32
    %c0_i32_0 = arith.constant 0 : i32
    %1 = arith.cmpi eq, %arg2, %c0_i32_0 : i32
    %2 = arith.andi %0, %1 : i1
    %3 = arith.extui %2 : i1 to i32
    %c0_i32_1 = arith.constant 0 : i32
    %4 = arith.cmpi ne, %3, %c0_i32_1 : i32
    scf.if %4 {
      %cst_10 = arith.constant 0xFF800000 : f32
      %18 = vector.broadcast %cst_10 : f32 to vector<16x1xf32>
      %c0_11 = arith.constant 0 : index
      %c0_12 = arith.constant 0 : index
      %19 = vector.load %arg7[%c0_11, %c0_12] : memref<16x1xf32, #tpu.memory_space<vmem>>, vector<16x1xf32>
      tpu.vector_store %arg7[%c0_11, %c0_12], %18 {strides = array<i32>} : memref<16x1xf32, #tpu.memory_space<vmem>>, vector<16x1xf32>,
      %cst_13 = arith.constant 0.000000e+00 : f32
      %20 = vector.broadcast %cst_13 : f32 to vector<16x1xf32>
      %c0_14 = arith.constant 0 : index
      %c0_15 = arith.constant 0 : index
      %21 = vector.load %arg8[%c0_14, %c0_15] : memref<16x1xf32, #tpu.memory_space<vmem>>, vector<16x1xf32>
      tpu.vector_store %arg8[%c0_14, %c0_15], %20 {strides = array<i32>} : memref<16x1xf32, #tpu.memory_space<vmem>>, vector<16x1xf32>,
    } else {
    }
    %c0 = arith.constant 0 : index
    %c0_2 = arith.constant 0 : index
    %5 = vector.load %arg3[%c0, %c0_2] : memref<16x32xf32, #tpu.memory_space<vmem>>, vector<16x32xf32>
    %6 = arith.truncf %5 : vector<16x32xf32> to vector<16x32xbf16>
    %c0_3 = arith.constant 0 : index
    %c0_4 = arith.constant 0 : index
    %7 = vector.load %arg4[%c0_3, %c0_4] : memref<32x128xbf16, #tpu.memory_space<vmem>>, vector<32x128xbf16>
    %cst = arith.constant dense<0.000000e+00> : vector<16x128xf32>
    %8 = tpu.matmul %6, %7, %cst {dimension_numbers = #tpu.dot_dimension_numbers<[1], [0], [0], [1], [0, 0, 1, 1], [], []>} : vector<16x32xbf16>, vector<32x128xbf16>, vector<16x128xf32> -> vector<16x128xf32>
    %c0_5 = arith.constant 0 : index
    %c0_6 = arith.constant 0 : index
    %9 = vector.load %arg5[%c0_5, %c0_6] : memref<1x128xf32, #tpu.memory_space<vmem>>, vector<1x128xf32>
    %10 = vector.broadcast %9 : vector<1x128xf32> to vector<16x128xf32>
    %11 = arith.addf %8, %10 : vector<16x128xf32>
    %c0_i32_7 = arith.constant 0 : i32
    %12 = arith.cmpi eq, %arg1, %c0_i32_7 : i32
    %13 = arith.extui %12 : i1 to i32
    %c0_i32_8 = arith.constant 0 : i32
    %14 = arith.cmpi ne, %13, %c0_i32_8 : i32
    scf.if %14 {
      %c0_10 = arith.constant 0 : index
      %c0_11 = arith.constant 0 : index
      %18 = vector.load %arg7[%c0_10, %c0_11] : memref<16x1xf32, #tpu.memory_space<vmem>>, vector<16x1xf32>
      %cst_12 = arith.constant dense<0xFF800000> : vector<16xf32>
      %19 = vector.multi_reduction <maximumf>, %11, %cst_12 [1] : vector<16x128xf32> to vector<16xf32>
      %20 = vector.shape_cast %19 : vector<16xf32> to vector<16x1xf32>
      %21 = arith.maximumf %18, %20 : vector<16x1xf32>
      %c0_13 = arith.constant 0 : index
      %c0_14 = arith.constant 0 : index
      %22 = vector.load %arg8[%c0_13, %c0_14] : memref<16x1xf32, #tpu.memory_space<vmem>>, vector<16x1xf32>
      %23 = arith.subf %18, %21 : vector<16x1xf32>
      %24 = math.exp %23 : vector<16x1xf32>
      %25 = arith.mulf %22, %24 : vector<16x1xf32>
      %26 = vector.broadcast %21 : vector<16x1xf32> to vector<16x128xf32>
      %27 = arith.subf %11, %26 : vector<16x128xf32>
      %28 = math.exp %27 : vector<16x128xf32>
      %cst_15 = arith.constant dense<0.000000e+00> : vector<16xf32>
      %29 = vector.multi_reduction <add>, %28, %cst_15 [1] : vector<16x128xf32> to vector<16xf32>
      %30 = vector.shape_cast %29 : vector<16xf32> to vector<16x1xf32>
      %31 = arith.addf %25, %30 : vector<16x1xf32>
      %c0_16 = arith.constant 0 : index
      %c0_17 = arith.constant 0 : index
      %32 = vector.load %arg8[%c0_16, %c0_17] : memref<16x1xf32, #tpu.memory_space<vmem>>, vector<16x1xf32>
      tpu.vector_store %arg8[%c0_16, %c0_17], %31 {strides = array<i32>} : memref<16x1xf32, #tpu.memory_space<vmem>>, vector<16x1xf32>,
      %c0_18 = arith.constant 0 : index
      %c0_19 = arith.constant 0 : index
      %33 = vector.load %arg7[%c0_18, %c0_19] : memref<16x1xf32, #tpu.memory_space<vmem>>, vector<16x1xf32>
      tpu.vector_store %arg7[%c0_18, %c0_19], %21 {strides = array<i32>} : memref<16x1xf32, #tpu.memory_space<vmem>>, vector<16x1xf32>,
    } else {
    }
    %c1_i32 = arith.constant 1 : i32
    %15 = arith.cmpi eq, %arg1, %c1_i32 : i32
    %16 = arith.extui %15 : i1 to i32
    %c0_i32_9 = arith.constant 0 : i32
    %17 = arith.cmpi ne, %16, %c0_i32_9 : i32
    scf.if %17 {
      %c0_10 = arith.constant 0 : index
      %c0_11 = arith.constant 0 : index
      %18 = vector.load %arg7[%c0_10, %c0_11] : memref<16x1xf32, #tpu.memory_space<vmem>>, vector<16x1xf32>
      %c0_12 = arith.constant 0 : index
      %c0_13 = arith.constant 0 : index
      %19 = vector.load %arg8[%c0_12, %c0_13] : memref<16x1xf32, #tpu.memory_space<vmem>>, vector<16x1xf32>
      %20 = math.log %19 : vector<16x1xf32>
      %21 = arith.addf %18, %20 : vector<16x1xf32>
      %22 = vector.broadcast %21 : vector<16x1xf32> to vector<16x128xf32>
      %23 = arith.subf %11, %22 : vector<16x128xf32>
      %c0_14 = arith.constant 0 : index
      %c0_15 = arith.constant 0 : index
      %24 = vector.load %arg6[%c0_14, %c0_15] : memref<16x128xf32, #tpu.memory_space<vmem>>, vector<16x128xf32>
      tpu.vector_store %arg6[%c0_14, %c0_15], %23 {strides = array<i32>} : memref<16x128xf32, #tpu.memory_space<vmem>>, vector<16x128xf32>,
    } else {
    }
    return
  }
  func.func @transform_0(%arg0: i32, %arg1: i32, %arg2: i32) -> (i32, i32) {
    %c0_i32 = arith.constant 0 : i32
    %c0_i32_0 = arith.constant 0 : i32
    return %arg0, %c0_i32 : i32, i32
  }
  func.func @transform_1(%arg0: i32, %arg1: i32, %arg2: i32) -> (i32, i32) {
    %c0_i32 = arith.constant 0 : i32
    %c0_i32_0 = arith.constant 0 : i32
    return %c0_i32, %arg2 : i32, i32
  }
  func.func @transform_2(%arg0: i32, %arg1: i32, %arg2: i32) -> (i32, i32) {
    %c0_i32 = arith.constant 0 : i32
    %c0_i32_0 = arith.constant 0 : i32
    return %c0_i32, %arg2 : i32, i32
  }
  func.func @transform_3(%arg0: i32, %arg1: i32, %arg2: i32) -> (i32, i32) {
    %0 = arith.muli %arg1, %arg2 : i32
    %c0_i32 = arith.constant 0 : i32
    return %arg0, %0 : i32, i32
  }
}

</mosaic_0001>

<bundles_post_ra>
// kernel: tpu_custom_call.1
= control target key start
LH: loop header
LB: loop body
LE: loop exit
PB: predicated region body
PF: predicated region fallthrough
CT: control target
= control target key end

     0   :  { %8 = vsyncpa [#allocation5], 0  ;;  %s888_s0 = inlined_call_operand.hbm [shape: f32[16,32], index: 0, kind: input, shape index: {}]   ;;  %s889_s1 = inlined_call_operand.hbm [shape: bf16[32,128], index: 1, kind: input, shape index: {}]   ;;  %s890_s2 = inlined_call_operand.vmem [shape: f32[1,128], index: 2, kind: input, shape index: {}]   ;;  %s891_s3 = inlined_call_operand.hbm [shape: f32[16,128], index: 3, kind: output, shape index: {}]  }
   0x1   :  { %9 = vsyncpa [#allocation8], 0 }
   0x2   :  { %10 = vsyncpa [#allocation6], 0 }
   0x3   :  { %12 = vsyncpa [#allocation6 + $0x1], 0  ;;  %s775_s12 = smov 0   ;;  %s777_s13 = smov 0  }
   0x4   :  { %s779_s14 = smov 0  }
   0x5 LB: > { %s510_s15 = sadd.s32 4294967295, %s738_s14   ;;  %s511_s16 = sadd.s32 4294967294, %s738_s14   ;;  %s738_s14 = sphi %s779_s14, %s18_s14   ;;  %s734_s13 = sphi %s777_s13, %s897_s13   ;;  %s730_s12 = sphi %s775_s12, %s896_s12  }
   0x6   : > { %s33_s17 = sadd.s32 1, %s734_s13  ;;  %p512_p0 = scmp.ge.s32.totalorder %s738_s14, 1 }
   0x7   : > { %p35_p1 = scmp.ge.s32.totalorder %s33_s17, 2  ;;  %p150_p2 = scmp.lt.s32.totalorder %s738_s14, 3 }
   0x8   : > { %p797_p3 = scmp.eq.s32.totalorder %s510_s15, 0  ;;  %s740_s20 = smov [#allocation4]  }
   0x9   : > { %s899_s17 = smov (%p35_p1, %s33_s17), 0  ;;  %p803_p4 = pnand %p512_p0, %p150_p2 }
   0xa   : > { %s165_s21 = sshll.u32 %s740_s20, 4  ;;  %s741_s23 = smov [#allocation7]   ;;  %s166_s21 = int_to_ptr.vmem [resolvable:$true] %s165_s21 }
   0xb   : > { %p554_p5 = pneg %p803_p4  ;;  %s180_s24 = sshll.u32 %s741_s23, 4  ;;  %s181_s24 = int_to_ptr.vmem [resolvable:$true] %s180_s24 }
   0xc   : > { %s639_s25 = scalar_lea.vmem %s166_s21, 256  ;;  %p647_p11 = scmp.lt.s32.totalorder %s166_s21, %s166_s21 }
   0xd   : > { %p811_p6 = pnand %p797_p3, %p554_p5  ;;  %p640_p8 = scmp.ne.s32.totalorder %s166_s21, %s639_s25 }
   0xe   : > { %p648_p12 = scmp.lt.s32.totalorder %s639_s25, %s639_s25 }
   0xf   : > { %p630_p7 = pneg %p811_p6 }
  0x10   : > { %p649_p13 = por %p648_p12, %p647_p11 }
  0x11   : > { %p642_p9 = pnand %p640_p8, %p630_p7 }
  0x13   : > { %p643_p10 = pneg %p642_p9 }
  0x15   : > { %p650_p0 = pnand %p649_p13, %p643_p10 }
  0x17   : > { %653 = shalt.err (!%p650_p0)
}
  0x18   : > { %s742_s26 = smov 128   ;;  %s743_s27 = smov 8  }
  0x19   : > { %557 = dma.hbm_to_vmem [thread:$0]  (!%p811_p6), %s888_s0, 256, %s166_s21, [#allocation5], %s742_s26, %s742_s26, %s743_s27  }
  0x1a   : > { %s665_s30 = scalar_lea.vmem %s181_s24, 256  ;;  %p673_p8 = scmp.lt.s32.totalorder %s181_s24, %s181_s24 }
  0x1b   : > { %p666_p1 = scmp.ne.s32.totalorder %s181_s24, %s665_s30  ;;  %p674_p9 = scmp.lt.s32.totalorder %s665_s30, %s665_s30 }
  0x1d   : > { %p668_p2 = pnand %p666_p1, %p630_p7  ;;  %p675_p11 = por %p674_p9, %p673_p8 }
  0x1f   : > { %p669_p5 = pneg %p668_p2 }
  0x21   : > { %p676_p10 = pnand %p675_p11, %p669_p5 }
  0x23   : > { %679 = shalt.err (!%p676_p10)
}
  0x24   : > { %s744_s4 = smov 64   ;;  %s745_s5 = smov 4  }
  0x25   : > { %560 = dma.hbm_to_vmem [thread:$0]  (!%p811_p6), %s889_s1, 256, %s181_s24, [#allocation8], %s744_s4, %s744_s4, %s745_s5  }
  0x26   : > { %202 = sbr.rel (%p803_p4) target bundleno = 859 (0x35b), region = 32 }
  0x2b   : > { %717 = dma.done.wait (%p797_p3), [#allocation5], 256  }
  0x2c   : > { %719 = vsyncadd (%p797_p3), [#allocation5], 4294967040 }
  0x2d   : > { %721 = dma.done.wait (%p797_p3), [#allocation8], 256  }
  0x2e   : > { %723 = vsyncadd (%p797_p3), [#allocation8], 4294967040  ;;  %p235_p7 = scmp.eq.s32.totalorder %s730_s12, 0 }
  0x2f   : > { %vm241_vm0 = vcmask (%p235_p7), 7168   ;;  %v746_v0 = vmov (%p235_p7), -inf   ;;  %v747_v1 = vmov (%p235_p7), 0.0  }
  0x30   : > { %240 = sbr.rel (!%p235_p7) target bundleno = 53 (0x35), region = 44  ;;  %242 = vst.msk [vmem:[#allocation2] sm:$0xff] (%p235_p7), %vm241_vm0, %v746_v0  ;;  %243 = vst.msk [vmem:[#allocation2 + $0x8] sm:$0xff] (%p235_p7), %vm241_vm0, %v746_v0 }
  0x31   : > { %244 = vst.msk [vmem:[#allocation3] sm:$0xff] (%p235_p7), %vm241_vm0, %v747_v1  ;;  %245 = vst.msk [vmem:[#allocation3 + $0x8] sm:$0xff] (%p235_p7), %vm241_vm0, %v747_v1 }
  0x35 PF: > { %v611_v2 = vld [vmem:[#allocation7 + $0x8] sm:$0xff]   ;;  %v748_v3 = vmov 0.0   ;;  %v612_v4 = vld [vmem:[#allocation7] sm:$0xff]   ;;  %vm749_vm1 = vmmov 0   ;;  %v246_v5 = vld [vmem:[#allocation4] sm:$0xff]  ;;  %vm272_vm2 = vcmask 261120  }
  0x36   : > { %534 = vmatprep.subr.bf16.mxu0 %v748_v3  ;;  %538 = vmatprep.mubr.msk.bf16.mxu0 %vm749_vm1, %v748_v3  ;;  %v247_v6 = vld [vmem:[#allocation4 + $0x8] sm:$0xff]  ;;  %v520_v8 = vld [vmem:[%s890_s2] ss:$0 sm:$0xff]  ;;  %p524_p3 = scmp.ne.s32.totalorder %s730_s12, 0 }
  0x37   : > { %535 = vmatpush3.bf16.msra.mxu0 %v611_v2  ;;  %v248_v7 = vpack.c.bf16 %v247_v6, %v246_v5 }
  0x38   : > { %536 = vmatprep.subr.bf16.mxu0 %v748_v3 }
  0x3b   : > { %537 = vmatpush3.bf16.msra.mxu0 %v612_v4 }
  0x3e   : > { %539 = vmatmul.mubr.msk.bf16.vlgmr.msra.gmra.mxu0 %vm272_vm2, %v248_v7 }
  0xfe   : > { %v310_v9 = vpop.f32.mrf.mxu0 }
  0xff   : > { %v847_v10 = vadd.f32 %v520_v8, %v310_v9 }
 0x100   : > { %v540_v11 = vpop.f32.mrf.mxu0  ;;  %319 = sbr.rel (%p524_p3) target bundleno = 688 (0x2b0), region = 48 }
 0x102   : > { %v313_v12 = vpop.f32.mrf.mxu0 }
 0x103   : > { %v849_v13 = vadd.f32 %v520_v8, %v313_v12 }
 0x104   : > { %v541_v14 = vpop.f32.mrf.mxu0 }
 0x105   : > { %322 = vmax.xlane.f32.xlu0 %v847_v10  ;;  %v750_v15 = vmov 0   ;;  %v320_v16 = vld [vmem:[#allocation2] sm:$0xff]  ;;  %vm360_vm3 = vcmask 7168   ;;  %v321_v19 = vld [vmem:[#allocation2 + $0x8] sm:$0xff]  ;;  %v328_v35 = vld [vmem:[#allocation3] sm:$0xff] }
 0x106   : > { %613 = vset.pattern.permute.xlu1 %v750_v15  ;;  %614 = vset.pattern.permute.xlu0 %v750_v15  ;;  %v329_v39 = vld [vmem:[#allocation3 + $0x8] sm:$0xff] }
 0x109   : > { %324 = vmax.xlane.f32.xlu0 %v849_v13 }
 0x18e   : > { %v323_v17 = vpop.xlane.xlu0 %322 }
 0x18f   : > { %v326_v18 = vmax.f32 %v320_v16, %v323_v17 }
 0x191   : > { %v330_v20 = vsub.f32 %v320_v16, %v326_v18  ;;  %363 = vst.msk [vmem:[#allocation2] sm:$0xff] %vm360_vm3, %v326_v18  ;;  %340 = vperm.xlu1 %613, %v326_v18  }
 0x192   : > { %v325_v21 = vpop.xlane.xlu0 %324 }
 0x193   : > { %v327_v22 = vmax.f32 %v321_v19, %v325_v21  ;;  %v332_v32 = vmul.f32 1.442695, %v330_v20 }
 0x195   : > { %v331_v23 = vsub.f32 %v321_v19, %v327_v22  ;;  %364 = vst.msk [vmem:[#allocation2 + $0x8] sm:$0xff] %vm360_vm3, %v327_v22  ;;  %345 = vperm.xlu1 %613, %v327_v22  }
 0x197   : > { %v334_v33 = vmul.f32 1.442695, %v331_v23 }
 0x20c   : > { %v341_v24 = vpop.permute.xlu1 %340 }
 0x20d   : > { %v348_v25 = vsub.f32 %v847_v10, %v341_v24 }
 0x20f   : > { %v350_v26 = vmul.f32 1.442695, %v348_v25 }
 0x210   : > { %v346_v27 = vpop.permute.xlu1 %345 }
 0x211   : > { %615 = vpow2.f32 %v350_v26  ;;  %v349_v28 = vsub.f32 %v849_v13, %v346_v27 }
 0x213   : > { %v352_v29 = vmul.f32 1.442695, %v349_v28 }
 0x215   : > { %617 = vpow2.f32 %v352_v29 }
 0x216   : > { %619 = vpow2.f32 %v332_v32 }
 0x217   : > { %621 = vpow2.f32 %v334_v33 }
 0x21e   : > { %v616_v30 = vpop.eup %615 }
 0x21f   : > { %354 = vadd.xlane.f32.xlu0 %v616_v30 }
 0x222   : > { %v618_v31 = vpop.eup %617 }
 0x223   : > { %356 = vadd.xlane.f32.xlu1 %v618_v31  ;;  %v620_v34 = vpop.eup %619 }
 0x224   : > { %v336_v36 = vmul.f32 %v620_v34, %v328_v35  ;;  %v622_v37 = vpop.eup %621 }
 0x225   : > { %v337_v41 = vmul.f32 %v622_v37, %v329_v39 }
 0x2a8   : > { %v355_v38 = vpop.xlane.xlu0 %354 }
 0x2a9   : > { %v358_v40 = vadd.f32 %v355_v38, %v336_v36 }
 0x2ab   : > { %361 = vst.msk [vmem:[#allocation3] sm:$0xff] %vm360_vm3, %v358_v40 }
 0x2ac   : > { %v357_v42 = vpop.xlane.xlu1 %356 }
 0x2ad   : > { %v359_v43 = vadd.f32 %v357_v42, %v337_v41 }
 0x2af   : > { %362 = vst.msk [vmem:[#allocation3 + $0x8] sm:$0xff] %vm360_vm3, %v359_v43 }
 0x2b0 PF: > { %p525_p4 = scmp.ne.s32.totalorder %s730_s12, 1 }
 0x2b2   : > { %368 = sbr.rel (%p525_p4) target bundleno = 845 (0x34d), region = 52 }
 0x2b7   : > { %v371_v44 = vld [vmem:[#allocation3] sm:$0xff]  ;;  %v751_v45 = vmov 0   ;;  %v372_v46 = vld [vmem:[#allocation3 + $0x8] sm:$0xff]  ;;  %v369_v48 = vld [vmem:[#allocation2] sm:$0xff] }
 0x2b8   : > { %623 = vset.pattern.permute.xlu0 %v751_v45  ;;  %624 = vlog2.f32 %v371_v44  ;;  %v370_v51 = vld [vmem:[#allocation2 + $0x8] sm:$0xff] }
 0x2b9   : > { %626 = vlog2.f32 %v372_v46 }
 0x2c5   : > { %v625_v47 = vpop.eup %624 }
 0x2c6   : > { %v627_v49 = vpop.eup %626  ;;  %v374_v50 = vmul.f32 0.6931472, %v625_v47 }
 0x2c7   : > { %v376_v52 = vmul.f32 0.6931472, %v627_v49 }
 0x2c8   : > { %v377_v53 = vadd.f32 %v374_v50, %v369_v48 }
 0x2c9   : > { %v378_v54 = vadd.f32 %v376_v52, %v370_v51 }
 0x2ca   : > { %381 = vperm.xlu0 %623, %v377_v53  }
 0x2ce   : > { %386 = vperm.xlu0 %623, %v378_v54  }
 0x345   : > { %v382_v55 = vpop.permute.xlu0 %381 }
 0x346   : > { %v389_v56 = vsub.f32 %v847_v10, %v382_v55 }
 0x348   : > { %391 = vst [vmem:[#allocation9] sm:$0xff] %v389_v56 }
 0x349   : > { %v387_v57 = vpop.permute.xlu0 %386 }
 0x34a   : > { %v390_v58 = vsub.f32 %v849_v13, %v387_v57 }
 0x34c   : > { %392 = vst [vmem:[#allocation9 + $0x8] sm:$0xff] %v390_v58 }
 0x34d PF: > { %p865_p6 = scmp.eq.s32.totalorder %s510_s15, 1  ;;  %s752_s11 = smov [#allocation9]  }
 0x34e   : > { %s409_s12 = sshll.u32 %s752_s11, 4  ;;  %s410_s12 = int_to_ptr.vmem [resolvable:$true] %s409_s12 }
 0x34f   : > { %s680_s18 = scalar_lea.vmem %s410_s12, 256  ;;  %s686_s19 = scalar_lea.vmem %s410_s12, 512 }
 0x350   : > { %p681_p12 = scmp.ne.s32.totalorder %s410_s12, %s680_s18  ;;  %p687_p1 = scmp.lt.s32.totalorder %s410_s12, %s410_s12 }
 0x351   : > { %p688_p2 = scmp.lt.s32.totalorder %s686_s19, %s680_s18 }
 0x352   : > { %p682_p13 = pnand %p681_p12, %p865_p6 }
 0x353   : > { %p689_p5 = por %p688_p2, %p687_p1 }
 0x354   : > { %p683_p0 = pneg %p682_p13 }
 0x356   : > { %p690_p8 = pnand %p689_p5, %p683_p0 }
 0x358   : > { %693 = shalt.err (!%p690_p8)
}
 0x359   : > { %s753_s20 = smov 128   ;;  %s754_s15 = smov 8  }
 0x35a   : > { %551 = dma.vmem_to_hbm [thread:$0]  (%p865_p6), %s410_s12, 256, %s891_s3, [#allocation6], %s753_s20, %s753_s20, %s754_s15  }
 0x35b PF: > { %p570_p9 = scmp.ge.s32.totalorder %s738_s14, 2  ;;  %p571_p11 = scmp.eq.s32.totalorder %s511_s16, 1 }
 0x35d   : > { %p562_p10 = pnand %p571_p11, %p570_p9 }
 0x35f   : > { %p563_p7 = pneg %p562_p10 }
 0x361   : > { %725 = dma.done.wait (%p563_p7), [#allocation6], 256  }
 0x362   : > { %727 = vsyncadd (%p563_p7), [#allocation6], 4294967040  ;;  %s18_s14 = sadd.s32 1, %s738_s14   ;;  %s896_s12 = smov %s734_s13 }
 0x363   : > { %p15_p3 = scmp.ge.s32.totalorder %s18_s14, 4   ;;  %s897_s13 = smov %s899_s17 }
 0x365   :  { %17 = sbr.rel (!%p15_p3) target bundleno = 5 (0x5), region = 90 }
 0x36a   :  { %430 = vsyncpa [#allocation5], 1 }
 0x36b   :  { %432 = vsyncpa [#allocation5 + $0x1], 1 }
 0x36c   :  { %433 = vsyncpa [#allocation8], 1 }
 0x36d   :  { %434 = vsyncpa [#allocation6], 1 }
 0x36e   :  { %436 = vsyncpa [#allocation6 + $0x1], 1 }

</bundles_post_ra>
